<compile_context>
chip_gen: v7x
topology: tpu7x:2x2x1
jax: 0.10.0
libtpu: 0.0.40
codegen_flags: <defaults>
</compile_context>

<pallas_src>
from functools import partial

import jax
import jax.numpy as jnp
import numpy as np
from jax.experimental import pallas as pl
from jax.experimental.pallas import tpu as pltpu


def _round_up(x, m):
    return -(-x // m) * m


def mfm_conv_kernel(x_ref, w_ref, b_ref, o_ref, *, cout, taps, wp, l_out):
    """Fused conv (in-kernel im2col) + bias + max-feature-map for one image.

    x_ref: (1, Cin_pad, LX)          zero-padded image, channel-major,
                                     flattened padded spatial on the lane axis
    w_ref: (KH*KW, 2*Cout, Cin_pad)  per-tap conv weights (resident)
    b_ref: (2*Cout, 1)               bias (broadcast along lanes)
    o_ref: (1, Cout, L_out)          MFM output (lane-dense; pad lanes hold
                                     garbage and are discarded in the wrapper)
    """
    x = x_ref[0]                                        # (Cin_pad, LX)
    acc = jnp.zeros((2 * cout, l_out), jnp.float32)
    for t, (kh, kw) in enumerate(taps):
        d = kh * wp + kw                                # static lane offset
        xs = x[:, d:d + l_out]                          # lane-shifted view
        acc = acc + jnp.dot(w_ref[t], xs,
                            preferred_element_type=jnp.float32)
    acc = acc + b_ref[...]                              # (C2, 1) lane broadcast
    # max-feature-map: sublane-block max of the two channel halves (VPU only).
    o_ref[0] = jnp.maximum(acc[:cout], acc[cout:]).astype(o_ref.dtype)


def mfm_conv_forward(x_nchw, w_oihw, b, *, padding=1, compute_dtype=None):
    """Equivalent of mfm(type=1).forward for stride-1 'same' convs."""
    N, Cin, H, W = x_nchw.shape
    C2, _, KH, KW = w_oihw.shape
    Cout = C2 // 2
    assert Cout % 8 == 0, "MFM sublane split needs Cout % 8 == 0 (pad C2)"
    assert KH == KW and 2 * padding == KH - 1, "kernel covers stride-1 'same' convs"

    Hp, Wp = H + 2 * padding, W + 2 * padding
    L = Hp * Wp                              # per-image padded flat length
    cin_pad = _round_up(Cin, 8)              # channels on sublanes
    d_max = (KH - 1) * Wp + (KW - 1)         # largest tap lane offset
    l_out = _round_up(L, 128)                # lane-dense output width
    lx = l_out + _round_up(d_max, 128)       # input width incl. tap halo

    cdt = compute_dtype or x_nchw.dtype

    # Channel-major, spatially-padded, lane-padded input: (N, Cin_pad, LX).
    xp = jnp.pad(x_nchw, ((0, 0), (0, cin_pad - Cin),
                          (padding, padding), (padding, padding)))
    xp = xp.reshape(N, cin_pad, L)
    xp = jnp.pad(xp, ((0, 0), (0, 0), (0, lx - L))).astype(cdt)

    # OIHW -> (KH*KW, C2, Cin_pad); tap index t = kh*KW + kw.
    w_taps = jnp.transpose(w_oihw, (2, 3, 0, 1)).reshape(KH * KW, C2, Cin)
    w_taps = jnp.pad(w_taps, ((0, 0), (0, 0), (0, cin_pad - Cin))).astype(cdt)
    b2 = b.reshape(C2, 1).astype(jnp.float32)

    taps = tuple((kh, kw) for kh in range(KH) for kw in range(KW))

    out = pl.pallas_call(
        partial(mfm_conv_kernel, cout=Cout, taps=taps, wp=Wp, l_out=l_out),
        out_shape=jax.ShapeDtypeStruct((N, Cout, l_out), x_nchw.dtype),
        grid=(N,),
        in_specs=[
            pl.BlockSpec((1, cin_pad, lx), lambda n: (n, 0, 0)),       # image
            pl.BlockSpec((KH * KW, C2, cin_pad), lambda n: (0, 0, 0)),  # weights
            pl.BlockSpec((C2, 1), lambda n: (0, 0)),                   # bias
        ],
        out_specs=pl.BlockSpec((1, Cout, l_out), lambda n: (n, 0, 0)),
        compiler_params=pltpu.CompilerParams(
            dimension_semantics=("parallel",)),
    )(xp, w_taps, b2)

    # Channel-major padded-flat output -> NCHW valid region (no transpose:
    # output is already (N, Cout, ...) ordered).
    # TODO(synk): when chaining layers, keep this channel-major lane-dense
    # layout and feed the next mfm / pool kernel directly.
    out = out[:, :, :L].reshape(N, Cout, Hp, Wp)[:, :, :H, :W]
    return out


def mfm_reference(x_nchw, w_oihw, b, *, padding=1):
    """Pure-JAX reference matching torch Conv2d + split + max."""
    y = jax.lax.conv_general_dilated(
        x_nchw, w_oihw,
        window_strides=(1, 1),
        padding=[(padding, padding), (padding, padding)],
        dimension_numbers=("NCHW", "OIHW", "NCHW"),
    ) + b.reshape(1, -1, 1, 1)
    c2 = w_oihw.shape[0]
    cout = c2 // 2
    return jnp.maximum(y[:, :cout], y[:, cout:])


if __name__ == "__main__":
    # Module config: mfm(in_channels=4, out_channels=8, kernel_size=3,
    # stride=1, padding=1, type=1) -- the core building block of
    # network_9layers.features, at small test shapes.
    N, Cin, H, W = 2, 4, 16, 16
    Cout, KH, KW = 8, 3, 3

    key = jax.random.PRNGKey(0)
    kx, kw_, kb = jax.random.split(key, 3)

    x = jax.random.normal(kx, (N, Cin, H, W), dtype=jnp.float32)
    # Deterministic synthetic parameters (PyTorch OIHW layout for Conv2d).
    fan_in = Cin * KH * KW
    bound = 1.0 / np.sqrt(fan_in)
    w = jax.random.uniform(kw_, (2 * Cout, Cin, KH, KW),
                           minval=-bound, maxval=bound, dtype=jnp.float32)
    b = jax.random.uniform(kb, (2 * Cout,),
                           minval=-bound, maxval=bound, dtype=jnp.float32)

    out = mfm_conv_forward(x, w, b, padding=1)
    out = jax.block_until_ready(out)

    ref = mfm_reference(x, w, b, padding=1)
    np.testing.assert_allclose(np.asarray(out), np.asarray(ref),
                               rtol=1e-5, atol=1e-5)

    assert out.shape == (N, Cout, H, W)
    print("KERNEL_OK")
</pallas_src>

<mosaic_0001>
module attributes {stable_mosaic.version = 11 : i64} {
  func.func @mfm_conv_kernel(%arg0: i32, %arg1: memref<1x8x512xf32, #tpu.memory_space<vmem>>, %arg2: memref<9x16x8xf32, #tpu.memory_space<vmem>>, %arg3: memref<16x1xf32, #tpu.memory_space<vmem>>, %arg4: memref<1x8x384xf32, #tpu.memory_space<vmem>>) attributes {dimension_semantics = [#tpu.dimension_semantics<parallel>], iteration_bounds = array<i64: 2>, scalar_prefetch = 0 : i64, scratch_operands = 0 : i64, tpu.core_type = #tpu.core_type<tc>, window_params = [{transform_indices = @transform_0, window_bounds = array<i64: 1, 8, 512>}, {pipeline_mode = #tpu.pipeline_mode<synchronous>, transform_indices = @transform_1, window_bounds = array<i64: 9, 16, 8>}, {pipeline_mode = #tpu.pipeline_mode<synchronous>, transform_indices = @transform_2, window_bounds = array<i64: 16, 1>}, {transform_indices = @transform_3, window_bounds = array<i64: 1, 8, 384>}]} {
    %c0 = arith.constant 0 : index
    %c0_0 = arith.constant 0 : index
    %c0_1 = arith.constant 0 : index
    %0 = vector.load %arg1[%c0, %c0_0, %c0_1] : memref<1x8x512xf32, #tpu.memory_space<vmem>>, vector<1x8x512xf32>
    %1 = vector.shape_cast %0 : vector<1x8x512xf32> to vector<8x512xf32>
    %cst = arith.constant 0.000000e+00 : f32
    %2 = vector.broadcast %cst : f32 to vector<16x384xf32>
    %3 = vector.extract_strided_slice %1 {offsets = [0, 0], sizes = [8, 384], strides = [1, 1]} : vector<8x512xf32> to vector<8x384xf32>
    %c0_2 = arith.constant 0 : index
    %c0_3 = arith.constant 0 : index
    %c0_4 = arith.constant 0 : index
    %4 = vector.load %arg2[%c0_2, %c0_3, %c0_4] : memref<9x16x8xf32, #tpu.memory_space<vmem>>, vector<1x16x8xf32>
    %5 = vector.shape_cast %4 : vector<1x16x8xf32> to vector<16x8xf32>
    %cst_5 = arith.constant dense<0.000000e+00> : vector<16x384xf32>
    %6 = tpu.matmul %5, %3, %cst_5 {dimension_numbers = #tpu.dot_dimension_numbers<[1], [0], [0], [1], [0, 0, 1, 1], [], []>} : vector<16x8xf32>, vector<8x384xf32>, vector<16x384xf32> -> vector<16x384xf32>
    %7 = arith.addf %2, %6 : vector<16x384xf32>
    %8 = vector.extract_strided_slice %1 {offsets = [0, 1], sizes = [8, 384], strides = [1, 1]} : vector<8x512xf32> to vector<8x384xf32>
    %c1 = arith.constant 1 : index
    %c0_6 = arith.constant 0 : index
    %c0_7 = arith.constant 0 : index
    %9 = vector.load %arg2[%c1, %c0_6, %c0_7] : memref<9x16x8xf32, #tpu.memory_space<vmem>>, vector<1x16x8xf32>
    %10 = vector.shape_cast %9 : vector<1x16x8xf32> to vector<16x8xf32>
    %cst_8 = arith.constant dense<0.000000e+00> : vector<16x384xf32>
    %11 = tpu.matmul %10, %8, %cst_8 {dimension_numbers = #tpu.dot_dimension_numbers<[1], [0], [0], [1], [0, 0, 1, 1], [], []>} : vector<16x8xf32>, vector<8x384xf32>, vector<16x384xf32> -> vector<16x384xf32>
    %12 = arith.addf %7, %11 : vector<16x384xf32>
    %13 = vector.extract_strided_slice %1 {offsets = [0, 2], sizes = [8, 384], strides = [1, 1]} : vector<8x512xf32> to vector<8x384xf32>
    %c2 = arith.constant 2 : index
    %c0_9 = arith.constant 0 : index
    %c0_10 = arith.constant 0 : index
    %14 = vector.load %arg2[%c2, %c0_9, %c0_10] : memref<9x16x8xf32, #tpu.memory_space<vmem>>, vector<1x16x8xf32>
    %15 = vector.shape_cast %14 : vector<1x16x8xf32> to vector<16x8xf32>
    %cst_11 = arith.constant dense<0.000000e+00> : vector<16x384xf32>
    %16 = tpu.matmul %15, %13, %cst_11 {dimension_numbers = #tpu.dot_dimension_numbers<[1], [0], [0], [1], [0, 0, 1, 1], [], []>} : vector<16x8xf32>, vector<8x384xf32>, vector<16x384xf32> -> vector<16x384xf32>
    %17 = arith.addf %12, %16 : vector<16x384xf32>
    %18 = vector.extract_strided_slice %1 {offsets = [0, 18], sizes = [8, 384], strides = [1, 1]} : vector<8x512xf32> to vector<8x384xf32>
    %c3 = arith.constant 3 : index
    %c0_12 = arith.constant 0 : index
    %c0_13 = arith.constant 0 : index
    %19 = vector.load %arg2[%c3, %c0_12, %c0_13] : memref<9x16x8xf32, #tpu.memory_space<vmem>>, vector<1x16x8xf32>
    %20 = vector.shape_cast %19 : vector<1x16x8xf32> to vector<16x8xf32>
    %cst_14 = arith.constant dense<0.000000e+00> : vector<16x384xf32>
    %21 = tpu.matmul %20, %18, %cst_14 {dimension_numbers = #tpu.dot_dimension_numbers<[1], [0], [0], [1], [0, 0, 1, 1], [], []>} : vector<16x8xf32>, vector<8x384xf32>, vector<16x384xf32> -> vector<16x384xf32>
    %22 = arith.addf %17, %21 : vector<16x384xf32>
    %23 = vector.extract_strided_slice %1 {offsets = [0, 19], sizes = [8, 384], strides = [1, 1]} : vector<8x512xf32> to vector<8x384xf32>
    %c4 = arith.constant 4 : index
    %c0_15 = arith.constant 0 : index
    %c0_16 = arith.constant 0 : index
    %24 = vector.load %arg2[%c4, %c0_15, %c0_16] : memref<9x16x8xf32, #tpu.memory_space<vmem>>, vector<1x16x8xf32>
    %25 = vector.shape_cast %24 : vector<1x16x8xf32> to vector<16x8xf32>
    %cst_17 = arith.constant dense<0.000000e+00> : vector<16x384xf32>
    %26 = tpu.matmul %25, %23, %cst_17 {dimension_numbers = #tpu.dot_dimension_numbers<[1], [0], [0], [1], [0, 0, 1, 1], [], []>} : vector<16x8xf32>, vector<8x384xf32>, vector<16x384xf32> -> vector<16x384xf32>
    %27 = arith.addf %22, %26 : vector<16x384xf32>
    %28 = vector.extract_strided_slice %1 {offsets = [0, 20], sizes = [8, 384], strides = [1, 1]} : vector<8x512xf32> to vector<8x384xf32>
    %c5 = arith.constant 5 : index
    %c0_18 = arith.constant 0 : index
    %c0_19 = arith.constant 0 : index
    %29 = vector.load %arg2[%c5, %c0_18, %c0_19] : memref<9x16x8xf32, #tpu.memory_space<vmem>>, vector<1x16x8xf32>
    %30 = vector.shape_cast %29 : vector<1x16x8xf32> to vector<16x8xf32>
    %cst_20 = arith.constant dense<0.000000e+00> : vector<16x384xf32>
    %31 = tpu.matmul %30, %28, %cst_20 {dimension_numbers = #tpu.dot_dimension_numbers<[1], [0], [0], [1], [0, 0, 1, 1], [], []>} : vector<16x8xf32>, vector<8x384xf32>, vector<16x384xf32> -> vector<16x384xf32>
    %32 = arith.addf %27, %31 : vector<16x384xf32>
    %33 = vector.extract_strided_slice %1 {offsets = [0, 36], sizes = [8, 384], strides = [1, 1]} : vector<8x512xf32> to vector<8x384xf32>
    %c6 = arith.constant 6 : index
    %c0_21 = arith.constant 0 : index
    %c0_22 = arith.constant 0 : index
    %34 = vector.load %arg2[%c6, %c0_21, %c0_22] : memref<9x16x8xf32, #tpu.memory_space<vmem>>, vector<1x16x8xf32>
    %35 = vector.shape_cast %34 : vector<1x16x8xf32> to vector<16x8xf32>
    %cst_23 = arith.constant dense<0.000000e+00> : vector<16x384xf32>
    %36 = tpu.matmul %35, %33, %cst_23 {dimension_numbers = #tpu.dot_dimension_numbers<[1], [0], [0], [1], [0, 0, 1, 1], [], []>} : vector<16x8xf32>, vector<8x384xf32>, vector<16x384xf32> -> vector<16x384xf32>
    %37 = arith.addf %32, %36 : vector<16x384xf32>
    %38 = vector.extract_strided_slice %1 {offsets = [0, 37], sizes = [8, 384], strides = [1, 1]} : vector<8x512xf32> to vector<8x384xf32>
    %c7 = arith.constant 7 : index
    %c0_24 = arith.constant 0 : index
    %c0_25 = arith.constant 0 : index
    %39 = vector.load %arg2[%c7, %c0_24, %c0_25] : memref<9x16x8xf32, #tpu.memory_space<vmem>>, vector<1x16x8xf32>
    %40 = vector.shape_cast %39 : vector<1x16x8xf32> to vector<16x8xf32>
    %cst_26 = arith.constant dense<0.000000e+00> : vector<16x384xf32>
    %41 = tpu.matmul %40, %38, %cst_26 {dimension_numbers = #tpu.dot_dimension_numbers<[1], [0], [0], [1], [0, 0, 1, 1], [], []>} : vector<16x8xf32>, vector<8x384xf32>, vector<16x384xf32> -> vector<16x384xf32>
    %42 = arith.addf %37, %41 : vector<16x384xf32>
    %43 = vector.extract_strided_slice %1 {offsets = [0, 38], sizes = [8, 384], strides = [1, 1]} : vector<8x512xf32> to vector<8x384xf32>
    %c8 = arith.constant 8 : index
    %c0_27 = arith.constant 0 : index
    %c0_28 = arith.constant 0 : index
    %44 = vector.load %arg2[%c8, %c0_27, %c0_28] : memref<9x16x8xf32, #tpu.memory_space<vmem>>, vector<1x16x8xf32>
    %45 = vector.shape_cast %44 : vector<1x16x8xf32> to vector<16x8xf32>
    %cst_29 = arith.constant dense<0.000000e+00> : vector<16x384xf32>
    %46 = tpu.matmul %45, %43, %cst_29 {dimension_numbers = #tpu.dot_dimension_numbers<[1], [0], [0], [1], [0, 0, 1, 1], [], []>} : vector<16x8xf32>, vector<8x384xf32>, vector<16x384xf32> -> vector<16x384xf32>
    %47 = arith.addf %42, %46 : vector<16x384xf32>
    %c0_30 = arith.constant 0 : index
    %c0_31 = arith.constant 0 : index
    %48 = vector.load %arg3[%c0_30, %c0_31] : memref<16x1xf32, #tpu.memory_space<vmem>>, vector<16x1xf32>
    %49 = vector.broadcast %48 : vector<16x1xf32> to vector<16x384xf32>
    %50 = arith.addf %47, %49 : vector<16x384xf32>
    %51 = vector.extract_strided_slice %50 {offsets = [0, 0], sizes = [8, 384], strides = [1, 1]} : vector<16x384xf32> to vector<8x384xf32>
    %52 = vector.extract_strided_slice %50 {offsets = [8, 0], sizes = [8, 384], strides = [1, 1]} : vector<16x384xf32> to vector<8x384xf32>
    %53 = arith.maximumf %51, %52 : vector<8x384xf32>
    %c0_32 = arith.constant 0 : index
    %c0_33 = arith.constant 0 : index
    %c0_34 = arith.constant 0 : index
    %54 = vector.load %arg4[%c0_32, %c0_33, %c0_34] : memref<1x8x384xf32, #tpu.memory_space<vmem>>, vector<1x8x384xf32>
    %55 = vector.shape_cast %54 : vector<1x8x384xf32> to vector<8x384xf32>
    %56 = vector.shape_cast %53 : vector<8x384xf32> to vector<1x8x384xf32>
    tpu.vector_store %arg4[%c0_32, %c0_33, %c0_34], %56 {strides = array<i32>} : memref<1x8x384xf32, #tpu.memory_space<vmem>>, vector<1x8x384xf32>,
    return
  }
  func.func @transform_0(%arg0: i32) -> (i32, i32, i32) {
    %c0_i32 = arith.constant 0 : i32
    %c0_i32_0 = arith.constant 0 : i32
    %c0_i32_1 = arith.constant 0 : i32
    return %arg0, %c0_i32, %c0_i32_0 : i32, i32, i32
  }
  func.func @transform_1(%arg0: i32) -> (i32, i32, i32) {
    %c0_i32 = arith.constant 0 : i32
    %c0_i32_0 = arith.constant 0 : i32
    %c0_i32_1 = arith.constant 0 : i32
    %c0_i32_2 = arith.constant 0 : i32
    return %c0_i32, %c0_i32_0, %c0_i32_1 : i32, i32, i32
  }
  func.func @transform_2(%arg0: i32) -> (i32, i32) {
    %c0_i32 = arith.constant 0 : i32
    %c0_i32_0 = arith.constant 0 : i32
    %c0_i32_1 = arith.constant 0 : i32
    return %c0_i32, %c0_i32_0 : i32, i32
  }
  func.func @transform_3(%arg0: i32) -> (i32, i32, i32) {
    %c0_i32 = arith.constant 0 : i32
    %c0_i32_0 = arith.constant 0 : i32
    %c0_i32_1 = arith.constant 0 : i32
    return %arg0, %c0_i32, %c0_i32_0 : i32, i32, i32
  }
}

</mosaic_0001>

<bundles_post_ra>
// kernel: tpu_custom_call.1
= control target key start
LH: loop header
LB: loop body
LE: loop exit
PB: predicated region body
PF: predicated region fallthrough
CT: control target
= control target key end

     0   :  { %8 = vsyncpa [#allocation3], 0  ;;  %s2485_s0 = inlined_call_operand.vmem [shape: f32[2,8,512], index: 0, kind: input, shape index: {}]   ;;  %s2486_s1 = inlined_call_operand.vmem [shape: f32[9,16,8], index: 1, kind: input, shape index: {}]   ;;  %s2487_s2 = inlined_call_operand.vmem [shape: f32[16,1], index: 2, kind: input, shape index: {}]   ;;  %s2488_s3 = inlined_call_operand.hbm [shape: f32[2,8,384], index: 3, kind: output, shape index: {}]  }
   0x1   :  { %10 = vsyncpa [#allocation3 + $0x1], 0  ;;  %s2216_s12 = smov 0   ;;  %s2218_s13 = smov 0  }
   0x2   :  { %s2220_s14 = smov 0   ;;  %s2222_s15 = smov 0  }
   0x3 LB: > { %s2237_s16 = sadd.s32 4294967295, %s2183_s15   ;;  %s1886_s17 = sadd.s32 4294967294, %s2183_s15   ;;  %s2183_s15 = sphi %s2222_s15, %s2494_s15   ;;  %s2179_s14 = sphi %s2220_s14, %s2493_s14   ;;  %s2175_s13 = sphi %s2218_s13, %s2492_s13   ;;  %s2171_s12 = sphi %s2216_s12, %s2491_s12  }
   0x4   : > { %s2241_s18 = sadd.s32 1, %s2183_s15   ;;  %s91_s19 = sadd.s32 1, %s2179_s14 }
   0x5   : > { %s88_s20 = ssub.s32 %s2183_s15, %s2241_s18  ;;  %p101_p0 = scmp.ne.s32.totalorder %s2179_s14, %s2175_s13 }
   0x6   : > { %p89_p1 = scmp.eq.s32.totalorder %s88_s20, 0  ;;  %p102_p2 = scmp.eq.s32.totalorder %s2237_s16, 1 }
   0x7   : > { %p107_p3 = scmp.ne.s32.totalorder %s2175_s13, %s2171_s12  ;;  %p108_p4 = scmp.eq.s32.totalorder %s1886_s17, 1 }
   0x8   : > { %s2252_s21 = scalar_select %p89_p1, %s2179_s14, %s91_s19  }
   0x9   : > { %p2254_p5 = por %p102_p2, %p101_p0  ;;  %p2258_p6 = por %p108_p4, %p107_p3 }
   0xa   : > { %p1889_p7 = scmp.ge.s32.totalorder %s2183_s15, 1  ;;  %p140_p8 = scmp.lt.s32.totalorder %s2183_s15, 3 }
   0xc   : > { %p141_p9 = pnand %p1889_p7, %p140_p8 }
   0xd   : > { %p164_p10 = scmp.lt.s32.totalorder (!%p141_p9), %s2237_s16, 1  ;;  %v2185_v0 = vmov (!%p141_p9), 0.0   ;;  %s2186_s29 = smov (!%p141_p9), 127   ;;  %v1788_v5 = vld [vmem:[%s2487_s2] sm:$0xff] (!%p141_p9)  ;;  %v1789_v6 = vld [vmem:[%s2487_s2 + $0x8] sm:$0xff] (!%p141_p9)  ;;  %v2194_v7 = vmov (!%p141_p9), 0  }
   0xe   : > { %144 = sbr.rel (%p141_p9) target bundleno = 455 (0x1c7), region = 32  ;;  %268 = vmatprep.mubr.f32.mxu1 (!%p141_p9), %v2185_v0  ;;  %602 = vmatprep.mubr.f32.mxu0 (!%p141_p9), %v2185_v0  ;;  %s2187_s30 = smov (!%p141_p9), 126   ;;  %vm190_vm0 = vcmask (!%p141_p9), 1039360   ;;  %v1892_v13 = vld [vmem:[%s2486_s1 + $0x10] sm:$0xff] (!%p141_p9)  ;;  %vm197_vm1 = vcmask (!%p141_p9), 64512   ;;  %vm525_vm2 = vcmask (!%p141_p9), 1031168  }
   0xf   : > { %s2188_s4 = smov (!%p141_p9), 110   ;;  %s2189_s5 = smov (!%p141_p9), 109   ;;  %2119 = vset.pattern.permute.xlu0 (!%p141_p9), %v2194_v7  ;;  %2120 = vset.pattern.permute.xlu1 (!%p141_p9), %v2194_v7  ;;  %v1893_v18 = vld [vmem:[%s2486_s1 + $0x18] sm:$0xff] (!%p141_p9)  ;;  %v1902_v21 = vld [vmem:[%s2486_s1 + $0x20] sm:$0xff] (!%p141_p9)  ;;  %vm707_vm3 = vcmask (!%p141_p9), 900096   ;;  %v1903_v25 = vld [vmem:[%s2486_s1 + $0x28] sm:$0xff] (!%p141_p9) }
  0x10   : > { %s2190_s6 = smov (!%p141_p9), 108   ;;  %s2191_s7 = smov (!%p141_p9), 92   ;;  %v173_v27 = vld [vmem:[%s2486_s1] sm:$0xff] (!%p141_p9)  ;;  %v1908_v31 = vld [vmem:[%s2486_s1 + $0x30] sm:$0xff] (!%p141_p9)  ;;  %v174_v34 = vld [vmem:[%s2486_s1 + $0x8] sm:$0xff] (!%p141_p9)  ;;  %vm889_vm4 = vcmask (!%p141_p9), 891904  }
  0x11   : > { %s2192_s8 = smov (!%p141_p9), 91   ;;  %s2193_s9 = smov (!%p141_p9), 90   ;;  %v1909_v36 = vld [vmem:[%s2486_s1 + $0x38] sm:$0xff] (!%p141_p9)  ;;  %v1914_v41 = vld [vmem:[%s2486_s1 + $0x40] sm:$0xff] (!%p141_p9)  ;;  %vm1071_vm5 = vcmask (!%p141_p9), 883712   ;;  %v1915_v45 = vld [vmem:[%s2486_s1 + $0x48] sm:$0xff] (!%p141_p9) }
  0x12   : > { %v1920_v50 = vld [vmem:[%s2486_s1 + $0x50] sm:$0xff] (!%p141_p9)  ;;  %vm1253_vm6 = vcmask (!%p141_p9), 752640   ;;  %v1921_v54 = vld [vmem:[%s2486_s1 + $0x58] sm:$0xff] (!%p141_p9)  ;;  %v1926_v59 = vld [vmem:[%s2486_s1 + $0x60] sm:$0xff] (!%p141_p9)  ;;  %vm1435_vm7 = vcmask (!%p141_p9), 744448   ;;  %vm1617_vm8 = vcmask (!%p141_p9), 736256  }
  0x13   : > { %v1927_v63 = vld [vmem:[%s2486_s1 + $0x68] sm:$0xff] (!%p141_p9)  ;;  %s161_s20 = sand.u32 (!%p141_p9), 1, %s2175_s13   ;;  %s2069_s26 = smul.u32 (!%p141_p9), 384, %s2237_s16 }
  0x15   : > { %s165_s24 = scalar_select %p164_p10, %s2237_s16, 1 }
  0x16   : > { %s2195_s16 = smov [#allocation2]  }
  0x17   : > { %s1947_s25 = sshll.u32 %s165_s24, 5  ;;  %s2068_s24 = smul.u32 24, %s161_s20 }
  0x18   : > { %s168_s28 = scalar_lea.vmem %s2485_s0, %s1947_s25 }
  0x19   : > { %v2271_v1 = vld [vmem:[%s168_s28 + $0x8] sm:$0xff]  ;;  %v2273_v2 = vld [vmem:[%s168_s28] sm:$0xff]  ;;  %v2277_v3 = vld [vmem:[%s168_s28 + $0x10] sm:$0xff]  ;;  %s163_s25 = scalar_lea.vmem [#allocation2], %s2068_s24 }
  0x1a   : > { %184 = vrot.lane.b32.xlu0 %v2271_v1, %s2186_s29  ;;  %182 = vrot.lane.b32.xlu1 %v2273_v2, %s2186_s29  ;;  %v172_v4 = vld [vmem:[%s168_s28 + $0x18] sm:$0xff]  ;;  %s1827_s27 = sshll.u32 %s163_s25, 4  ;;  %s2445_s27 = int_to_ptr.vmem [resolvable:$true] %s1827_s27 }
  0x1e   : > { %186 = vrot.lane.b32.xlu0 %v2277_v3, %s2186_s29  ;;  %188 = vrot.lane.b32.xlu1 %v172_v4, %s2186_s29 }
  0x22   : > { %519 = vrot.lane.b32.xlu0 %v2271_v1, %s2187_s30  ;;  %521 = vrot.lane.b32.xlu1 %v2277_v3, %s2187_s30 }
  0x26   : > { %517 = vrot.lane.b32.xlu0 %v2273_v2, %s2187_s30  ;;  %523 = vrot.lane.b32.xlu1 %v172_v4, %s2187_s30  ;;  %s2443_s30 = scalar_lea.hbm %s2488_s3, %s2069_s26 }
  0x2a   : > { %701 = vrot.lane.b32.xlu0 %v2271_v1, %s2188_s4  ;;  %703 = vrot.lane.b32.xlu1 %v2277_v3, %s2188_s4 }
  0x2e   : > { %699 = vrot.lane.b32.xlu0 %v2273_v2, %s2188_s4  ;;  %705 = vrot.lane.b32.xlu1 %v172_v4, %s2188_s4  ;;  %s1813_s4 = scalar_lea.sflag [#allocation3], %s161_s20 }
  0x32   : > { %883 = vrot.lane.b32.xlu0 %v2271_v1, %s2189_s5  ;;  %885 = vrot.lane.b32.xlu1 %v2277_v3, %s2189_s5 }
  0x36   : > { %881 = vrot.lane.b32.xlu0 %v2273_v2, %s2189_s5  ;;  %887 = vrot.lane.b32.xlu1 %v172_v4, %s2189_s5  ;;  %s2121_s5 = scalar_lea.vmem %s2445_s27, 384 }
  0x37   : > { %p2122_p11 = scmp.ne.s32.totalorder %s2445_s27, %s2121_s5 }
  0x39   : > { %p2123_p12 = pnand %p2122_p11, %p2254_p5 }
  0x3a   : > { %1065 = vrot.lane.b32.xlu0 %v2271_v1, %s2190_s6  ;;  %1067 = vrot.lane.b32.xlu1 %v2277_v3, %s2190_s6 }
  0x3b   : > { %p2124_p13 = pneg %p2123_p12 }
  0x3e   : > { %1063 = vrot.lane.b32.xlu0 %v2273_v2, %s2190_s6  ;;  %1069 = vrot.lane.b32.xlu1 %v172_v4, %s2190_s6  ;;  %s2125_s6 = sshll.u32 %s2195_s16, 4  ;;  %s2126_s6 = int_to_ptr.vmem [resolvable:$false] %s2125_s6 }
  0x3f   : > { %p2128_p0 = scmp.lt.s32.totalorder %s2445_s27, %s2126_s6 }
  0x42   : > { %1247 = vrot.lane.b32.xlu0 %v2271_v1, %s2191_s7  ;;  %1249 = vrot.lane.b32.xlu1 %v2277_v3, %s2191_s7 }
  0x46   : > { %1245 = vrot.lane.b32.xlu0 %v2273_v2, %s2191_s7  ;;  %1251 = vrot.lane.b32.xlu1 %v172_v4, %s2191_s7  ;;  %s2127_s7 = scalar_lea.vmem %s2126_s6, 768 }
  0x47   : > { %p2129_p1 = scmp.lt.s32.totalorder %s2127_s7, %s2121_s5 }
  0x49   : > { %p2130_p2 = por %p2129_p1, %p2128_p0 }
  0x4a   : > { %1429 = vrot.lane.b32.xlu0 %v2271_v1, %s2192_s8  ;;  %1431 = vrot.lane.b32.xlu1 %v2277_v3, %s2192_s8 }
  0x4b   : > { %p2131_p3 = pnand %p2130_p2, %p2124_p13 }
  0x4e   : > { %1427 = vrot.lane.b32.xlu0 %v2273_v2, %s2192_s8  ;;  %1433 = vrot.lane.b32.xlu1 %v172_v4, %s2192_s8 }
  0x52   : > { %1611 = vrot.lane.b32.xlu0 %v2271_v1, %s2193_s9  ;;  %1613 = vrot.lane.b32.xlu1 %v2277_v3, %s2193_s9 }
  0x56   : > { %1609 = vrot.lane.b32.xlu0 %v2273_v2, %s2193_s9  ;;  %1615 = vrot.lane.b32.xlu1 %v172_v4, %s2193_s9 }
  0x5a   : > { %1792 = vperm.xlu0 %2119, %v1788_v5   ;;  %1797 = vperm.xlu1 %2120, %v1789_v6   ;;  %v1932_v5 = vld [vmem:[%s2486_s1 + $0x70] sm:$0xff] }
  0x8c   : > { %v185_v8 = vpop.permute.xlu0 %184  ;;  %v183_v9 = vpop.permute.xlu1 %182 }
  0x8d   : > { %v191_v14 = vsel %vm190_vm0, %v183_v9, %v185_v8  ;;  %v1933_v9 = vld [vmem:[%s2486_s1 + $0x78] sm:$0xff] }
  0x90   : > { %v187_v10 = vpop.permute.xlu0 %186  ;;  %v189_v11 = vpop.permute.xlu1 %188 }
  0x91   : > { %v192_v12 = vsel %vm190_vm0, %v185_v8, %v187_v10  ;;  %v193_v15 = vsel %vm190_vm0, %v187_v10, %v189_v11 }
  0x92   : > { %204 = vmatprep.subr.mxu1 %v192_v12 }
  0x93   : > { %205 = vmatpush1.msra.mxu1 %v191_v14  ;;  %v1938_v14 = vld [vmem:[%s2486_s1 + $0x80] sm:$0xff] }
  0x94   : > { %v520_v16 = vpop.permute.xlu0 %519  ;;  %1894 = vmatmul.mubr.msk.f32.vlgmr.msra.gmra.mrb[0].mxu1 %vm197_vm1, %v1892_v13  ;;  %1975 = vmatprep.subr.mxu1 %v193_v15  ;;  %v522_v17 = vpop.permute.xlu1 %521 }
  0x95   : > { %1976 = vmatpush3.msra.mxu1 %v193_v15  ;;  %274 = vmatprep.mubr.f32.mxu1 %v2185_v0  ;;  %v527_v19 = vsel %vm525_vm2, %v520_v16, %v522_v17 }
  0x96   : > { %538 = vmatprep.subr.mxu0 %v527_v19  ;;  %362 = vmatprep.subr.mxu1 %v2271_v1 }
  0x98   : > { %v518_v20 = vpop.permute.xlu0 %517  ;;  %1895 = vmatmul.mubr.msk.f32.gmra.mrb[2].mxu1 %vm197_vm1, %v1893_v18  ;;  %v524_v22 = vpop.permute.xlu1 %523 }
  0x99   : > { %v526_v23 = vsel %vm525_vm2, %v518_v20, %v520_v16  ;;  %1977 = vmatprep.mubr.msk.f32.mxu1 %vm197_vm1, %v1892_v13  ;;  %v528_v29 = vsel %vm525_vm2, %v522_v17, %v524_v22  ;;  %v1939_v16 = vld [vmem:[%s2486_s1 + $0x88] sm:$0xff] }
  0x9a   : > { %539 = vmatpush1.msra.mxu0 %v526_v23 }
  0x9b   : > { %1904 = vmatmul.mubr.msk.f32.vlgmr.msra.gmra.mrb[0].mxu0 %vm197_vm1, %v1902_v21 }
  0x9c   : > { %v702_v24 = vpop.permute.xlu0 %701  ;;  %1978 = vmatmul.mubr.msk.f32.vlgmr.msra.gmra.mrb[4].mxu1 %vm197_vm1, %v1893_v18  ;;  %608 = vmatprep.mubr.f32.mxu0 %v2185_v0  ;;  %v704_v26 = vpop.permute.xlu1 %703 }
  0x9d   : > { %363 = vmatpush1.msra.mxu1 %v2273_v2  ;;  %426 = vmatprep.mubr.f32.mxu1 %v2185_v0  ;;  %v709_v28 = vsel %vm707_vm3, %v702_v24, %v704_v26 }
  0x9e   : > { %1980 = vmatprep.subr.mxu1 %v2277_v3  ;;  %720 = vmatprep.subr.mxu0 %v709_v28 }
  0x9f   : > { %1905 = vmatmul.mubr.msk.f32.gmra.mrb[2].mxu0 %vm197_vm1, %v1903_v25 }
  0xa0   : > { %v700_v30 = vpop.permute.xlu0 %699  ;;  %1898 = vmatmul.mubr.msk.f32.vlgmr.msra.gmra.mrb[0].mxu1 %vm197_vm1, %v173_v27  ;;  %784 = vmatprep.mubr.f32.mxu0 %v2185_v0  ;;  %v706_v32 = vpop.permute.xlu1 %705 }
  0xa1   : > { %v708_v33 = vsel %vm707_vm3, %v700_v30, %v702_v24  ;;  %1981 = vmatpush3.msra.mxu1 %v2277_v3  ;;  %432 = vmatprep.mubr.f32.mxu1 %v2185_v0  ;;  %v710_v39 = vsel %vm707_vm3, %v704_v26, %v706_v32 }
  0xa2   : > { %1985 = vmatprep.subr.mxu1 %v528_v29  ;;  %721 = vmatpush1.msra.mxu0 %v708_v33 }
  0xa3   : > { %1910 = vmatmul.mubr.msk.f32.vlgmr.msra.gmra.mrb[0].mxu0 %vm197_vm1, %v1908_v31 }
  0xa4   : > { %v884_v35 = vpop.permute.xlu0 %883  ;;  %1899 = vmatmul.mubr.msk.f32.gmra.mrb[2].mxu1 %vm197_vm1, %v174_v34  ;;  %790 = vmatprep.mubr.f32.mxu0 %v2185_v0  ;;  %v886_v37 = vpop.permute.xlu1 %885 }
  0xa5   : > { %1982 = vmatprep.mubr.msk.f32.mxu1 %vm197_vm1, %v173_v27  ;;  %v891_v38 = vsel %vm889_vm4, %v884_v35, %v886_v37 }
  0xa6   : > { %902 = vmatprep.subr.mxu0 %v891_v38 }
  0xa7   : > { %1911 = vmatmul.mubr.msk.f32.gmra.mrb[2].mxu0 %vm197_vm1, %v1909_v36 }
  0xa8   : > { %v882_v40 = vpop.permute.xlu0 %881  ;;  %1983 = vmatmul.mubr.msk.f32.vlgmr.msra.gmra.mrb[4].mxu1 %vm197_vm1, %v174_v34  ;;  %966 = vmatprep.mubr.f32.mxu0 %v2185_v0  ;;  %v888_v42 = vpop.permute.xlu1 %887 }
  0xa9   : > { %v890_v43 = vsel %vm889_vm4, %v882_v40, %v884_v35  ;;  %1986 = vmatpush3.msra.mxu1 %v528_v29  ;;  %1987 = vmatprep.mubr.msk.f32.mxu1 %vm197_vm1, %v1902_v21  ;;  %v892_v48 = vsel %vm889_vm4, %v886_v37, %v888_v42 }
  0xaa   : > { %1990 = vmatprep.subr.mxu1 %v710_v39  ;;  %903 = vmatpush1.msra.mxu0 %v890_v43 }
  0xab   : > { %1916 = vmatmul.mubr.msk.f32.vlgmr.msra.gmra.mrb[0].mxu0 %vm197_vm1, %v1914_v41 }
  0xac   : > { %v1066_v44 = vpop.permute.xlu0 %1065  ;;  %972 = vmatprep.mubr.f32.mxu0 %v2185_v0  ;;  %v1068_v46 = vpop.permute.xlu1 %1067 }
  0xad   : > { %v1073_v47 = vsel %vm1071_vm5, %v1066_v44, %v1068_v46 }
  0xae   : > { %1084 = vmatprep.subr.mxu0 %v1073_v47 }
  0xaf   : > { %1917 = vmatmul.mubr.msk.f32.gmra.mrb[2].mxu0 %vm197_vm1, %v1915_v45 }
  0xb0   : > { %v1064_v49 = vpop.permute.xlu0 %1063  ;;  %1988 = vmatmul.mubr.msk.f32.vlgmr.msra.gmra.mrb[4].mxu1 %vm197_vm1, %v1903_v25  ;;  %1148 = vmatprep.mubr.f32.mxu0 %v2185_v0  ;;  %v1070_v51 = vpop.permute.xlu1 %1069 }
  0xb1   : > { %v1072_v52 = vsel %vm1071_vm5, %v1064_v49, %v1066_v44  ;;  %1991 = vmatpush3.msra.mxu1 %v710_v39  ;;  %1992 = vmatprep.mubr.msk.f32.mxu1 %vm197_vm1, %v1908_v31  ;;  %v1074_v57 = vsel %vm1071_vm5, %v1068_v46, %v1070_v51 }
  0xb2   : > { %1995 = vmatprep.subr.mxu1 %v892_v48  ;;  %1085 = vmatpush1.msra.mxu0 %v1072_v52 }
  0xb3   : > { %1922 = vmatmul.mubr.msk.f32.vlgmr.msra.gmra.mrb[0].mxu0 %vm197_vm1, %v1920_v50 }
  0xb4   : > { %v1248_v53 = vpop.permute.xlu0 %1247  ;;  %1154 = vmatprep.mubr.f32.mxu0 %v2185_v0  ;;  %v1250_v55 = vpop.permute.xlu1 %1249 }
  0xb5   : > { %v1255_v56 = vsel %vm1253_vm6, %v1248_v53, %v1250_v55 }
  0xb6   : > { %1266 = vmatprep.subr.mxu0 %v1255_v56 }
  0xb7   : > { %1923 = vmatmul.mubr.msk.f32.gmra.mrb[2].mxu0 %vm197_vm1, %v1921_v54 }
  0xb8   : > { %v1246_v58 = vpop.permute.xlu0 %1245  ;;  %1993 = vmatmul.mubr.msk.f32.vlgmr.msra.gmra.mrb[4].mxu1 %vm197_vm1, %v1909_v36  ;;  %1330 = vmatprep.mubr.f32.mxu0 %v2185_v0  ;;  %v1252_v60 = vpop.permute.xlu1 %1251 }
  0xb9   : > { %v1254_v61 = vsel %vm1253_vm6, %v1246_v58, %v1248_v53  ;;  %1996 = vmatpush3.msra.mxu1 %v892_v48  ;;  %1997 = vmatprep.mubr.msk.f32.mxu1 %vm197_vm1, %v1914_v41  ;;  %v1256_v3 = vsel %vm1253_vm6, %v1250_v55, %v1252_v60 }
  0xba   : > { %2000 = vmatprep.subr.mxu1 %v1074_v57  ;;  %1267 = vmatpush1.msra.mxu0 %v1254_v61 }
  0xbb   : > { %1928 = vmatmul.mubr.msk.f32.vlgmr.msra.gmra.mrb[0].mxu0 %vm197_vm1, %v1926_v59 }
  0xbc   : > { %v1430_v62 = vpop.permute.xlu0 %1429  ;;  %1336 = vmatprep.mubr.f32.mxu0 %v2185_v0  ;;  %v1432_v1 = vpop.permute.xlu1 %1431 }
  0xbd   : > { %v1437_v2 = vsel %vm1435_vm7, %v1430_v62, %v1432_v1 }
  0xbe   : > { %1448 = vmatprep.subr.mxu0 %v1437_v2 }
  0xbf   : > { %1929 = vmatmul.mubr.msk.f32.gmra.mrb[2].mxu0 %vm197_vm1, %v1927_v63 }
  0xc0   : > { %v1428_v4 = vpop.permute.xlu0 %1427  ;;  %1998 = vmatmul.mubr.msk.f32.vlgmr.msra.gmra.mrb[4].mxu1 %vm197_vm1, %v1915_v45  ;;  %1512 = vmatprep.mubr.f32.mxu0 %v2185_v0  ;;  %v1434_v6 = vpop.permute.xlu1 %1433 }
  0xc1   : > { %v1436_v7 = vsel %vm1435_vm7, %v1428_v4, %v1430_v62  ;;  %2001 = vmatpush3.msra.mxu1 %v1074_v57  ;;  %2002 = vmatprep.mubr.msk.f32.mxu1 %vm197_vm1, %v1920_v50  ;;  %v1438_v12 = vsel %vm1435_vm7, %v1432_v1, %v1434_v6 }
  0xc2   : > { %2005 = vmatprep.subr.mxu1 %v1256_v3  ;;  %1449 = vmatpush1.msra.mxu0 %v1436_v7 }
  0xc3   : > { %1934 = vmatmul.mubr.msk.f32.vlgmr.msra.gmra.mrb[0].mxu0 %vm197_vm1, %v1932_v5 }
  0xc4   : > { %v1612_v8 = vpop.permute.xlu0 %1611  ;;  %1518 = vmatprep.mubr.f32.mxu0 %v2185_v0  ;;  %v1614_v10 = vpop.permute.xlu1 %1613 }
  0xc5   : > { %v1619_v11 = vsel %vm1617_vm8, %v1612_v8, %v1614_v10 }
  0xc6   : > { %1630 = vmatprep.subr.mxu0 %v1619_v11 }
  0xc7   : > { %1935 = vmatmul.mubr.msk.f32.gmra.mrb[2].mxu0 %vm197_vm1, %v1933_v9 }
  0xc8   : > { %v1610_v13 = vpop.permute.xlu0 %1609  ;;  %2003 = vmatmul.mubr.msk.f32.vlgmr.msra.gmra.mrb[4].mxu1 %vm197_vm1, %v1921_v54  ;;  %1694 = vmatprep.mubr.f32.mxu0 %v2185_v0  ;;  %v1616_v17 = vpop.permute.xlu1 %1615 }
  0xc9   : > { %v1618_v15 = vsel %vm1617_vm8, %v1610_v13, %v1612_v8  ;;  %2006 = vmatpush3.msra.mxu1 %v1256_v3  ;;  %2007 = vmatprep.mubr.msk.f32.mxu1 %vm197_vm1, %v1926_v59  ;;  %v1620_v18 = vsel %vm1617_vm8, %v1614_v10, %v1616_v17 }
  0xca   : > { %2010 = vmatprep.subr.mxu1 %v1438_v12  ;;  %1631 = vmatpush1.msra.mxu0 %v1618_v15 }
  0xcb   : > { %1940 = vmatmul.mubr.msk.f32.vlgmr.msra.gmra.mrb[0].mxu0 %vm197_vm1, %v1938_v14 }
  0xcc   : > { %1700 = vmatprep.mubr.f32.mxu0 %v2185_v0 }
  0xcf   : > { %1941 = vmatmul.mubr.msk.f32.gmra.mrb[2].mxu0 %vm197_vm1, %v1939_v16 }
  0xd0   : > { %2008 = vmatmul.mubr.msk.f32.vlgmr.msra.gmra.mrb[4].mxu1 %vm197_vm1, %v1927_v63 }
  0xd1   : > { %2011 = vmatpush3.msra.mxu1 %v1438_v12  ;;  %2012 = vmatprep.mubr.msk.f32.mxu1 %vm197_vm1, %v1932_v5 }
  0xd2   : > { %2015 = vmatprep.subr.mxu1 %v1620_v18 }
  0xd8   : > { %2013 = vmatmul.mubr.msk.f32.vlgmr.msra.gmra.mrb[4].mxu1 %vm197_vm1, %v1933_v9 }
  0xd9   : > { %2016 = vmatpush3.msra.mxu1 %v1620_v18  ;;  %2017 = vmatprep.mubr.msk.f32.mxu1 %vm197_vm1, %v1938_v14  ;;  %v1793_v26 = vpop.permute.xlu0 %1792  ;;  %v1798_v28 = vpop.permute.xlu1 %1797 }
  0xe0   : > { %2018 = vmatmul.mubr.msk.f32.vlgmr.msra.gmra.mrb[4].mxu1 %vm197_vm1, %v1939_v16 }
 0x173   : > { %v428_v0 = vpop.f32.mrb[0].mxu1 }
 0x174   : > { %v430_v19 = vpop.f32.mrb[1].mxu1 }
 0x177   : > { %v434_v20 = vpop.f32.mrb[2].mxu1 }
 0x178   : > { %v436_v21 = vpop.f32.mrb[3].mxu1 }
 0x19e   : > { %v1696_v22 = vpop.f32.mrb[0].mxu0 }
 0x19f   : > { %v2020_v23 = vadd.f32 %v1696_v22, %v428_v0  ;;  %v1698_v24 = vpop.f32.mrb[1].mxu0 }
 0x1a0   : > { %v2021_v25 = vadd.f32 %v1698_v24, %v430_v19 }
 0x1a1   : > { %v1800_v32 = vadd.f32 %v2020_v23, %v1793_v26 }
 0x1a2   : > { %v1702_v27 = vpop.f32.mrb[2].mxu0  ;;  %v1801_v34 = vadd.f32 %v2021_v25, %v1793_v26 }
 0x1a3   : > { %v2022_v29 = vadd.f32 %v1702_v27, %v434_v20  ;;  %v1704_v30 = vpop.f32.mrb[3].mxu0 }
 0x1a4   : > { %v2023_v31 = vadd.f32 %v1704_v30, %v436_v21 }
 0x1a5   : > { %v1803_v33 = vadd.f32 %v2022_v29, %v1798_v28 }
 0x1a6   : > { %v1804_v35 = vadd.f32 %v2023_v31, %v1798_v28 }
 0x1a7   : > { %v1806_v36 = vmax.f32 %v1800_v32, %v1803_v33 }
 0x1a8   : > { %v1807_v37 = vmax.f32 %v1801_v34, %v1804_v35 }
 0x1a9   : > { %1809 = vst [vmem:[%s163_s25] sm:$0xff] %v1806_v36 }
 0x1aa   : > { %1810 = vst [vmem:[%s163_s25 + $0x8] sm:$0xff] %v1807_v37 }
 0x1b3   : > { %v2019_v38 = vpop.f32.mrb[4].mxu1 }
 0x1b4   : > { %v1805_v39 = vadd.f32 %v2019_v38, %v1798_v28  ;;  %v1773_v40 = vpop.f32.mrb[5].mxu1 }
 0x1b5   : > { %v1802_v41 = vadd.f32 %v1793_v26, %v1773_v40 }
 0x1b7   : > { %v1808_v42 = vmax.f32 %v1802_v41, %v1805_v39 }
 0x1b9   : > { %1811 = vst [vmem:[%s163_s25 + $0x10] sm:$0xff] %v1808_v42 }
 0x1ba   : > { %2134 = shalt.err (!%p2131_p3)
}
 0x1bb   : > { %s2135_s8 = scalar_lea.hbm %s2443_s30, 384  ;;  %s2139_s11 = scalar_lea.hbm %s2488_s3, 768 }
 0x1bc   : > { %p2136_p4 = scmp.ne.s32.totalorder %s2443_s30, %s2135_s8  ;;  %p2140_p9 = scmp.lt.u32.totalorder %s2443_s30, %s2488_s3 }
 0x1bd   : > { %p2141_p10 = scmp.lt.u32.totalorder %s2139_s11, %s2135_s8  ;;  %p2143_p12 = scmp.lt.u32.totalorder %s2135_s8, %s2443_s30 }
 0x1be   : > { %p2137_p7 = pnand %p2136_p4, %p2254_p5 }
 0x1bf   : > { %p2142_p11 = por %p2141_p10, %p2140_p9 }
 0x1c0   : > { %p2138_p8 = pneg %p2137_p7 }
 0x1c1   : > { %p2144_p13 = por %p2143_p12, %p2142_p11 }
 0x1c3   : > { %p2145_p0 = pnand %p2144_p13, %p2138_p8 }
 0x1c5   : > { %2148 = shalt.err (!%p2145_p0)
}
 0x1c6   : > { %2070 = dma.vmem_to_hbm [thread:$0]  (%p2254_p5), %s2445_s27, 384, %s2443_s30, %s1813_s4  }
 0x1c7 PF: > { %p2076_p1 = scmp.ge.s32.totalorder %s2183_s15, 2  ;;  %s1839_s20 = sand.u32 1, %s2171_s12  }
 0x1c8   : > { %s1840_s24 = scalar_lea.sflag [#allocation3], %s1839_s20 }
 0x1c9   : > { %p2073_p2 = pnand %p2076_p1, %p2258_p6 }
 0x1cb   : > { %2166 = dma.done.wait (!%p2073_p2), %s1840_s24, 384  }
 0x1cc   : > { %2168 = vsyncadd (!%p2073_p2), %s1840_s24, 4294966912  ;;  %p13_p3 = scmp.ge.s32.totalorder %s2241_s18, 4   ;;  %s2491_s12 = smov %s2175_s13 }
 0x1cd   : > { %s2492_s13 = smov %s2179_s14  ;;  %s2493_s14 = smov %s2252_s21 }
 0x1ce   : > { %s2494_s15 = smov %s2241_s18  ;;  %15 = sbr.rel (!%p13_p3) target bundleno = 3 (0x3), region = 75 }
 0x1d5   :  { %1845 = vsyncpa [#allocation3], 1 }
 0x1d6   :  { %1847 = vsyncpa [#allocation3 + $0x1], 1 }

</bundles_post_ra>
